<compile_context>
chip_gen: v5e
topology: v5e:2x2
jax: 0.10.0
libtpu: 0.0.40
codegen_flags: <defaults>
</compile_context>

<pallas_src>
import jax
import jax.numpy as jnp
from jax.experimental import pallas as pl
from jax.experimental.pallas import tpu as pltpu


def _softplus(x):
    # Numerically-stable softplus: max(x, 0) + log1p(exp(-|x|)).
    # Matches torch.nn.Softplus(beta=1, threshold=20) to fp32 roundoff:
    # for x > 20 the correction term is < 2.1e-9, i.e. the result is x.
    return jnp.maximum(x, 0.0) + jnp.log1p(jnp.exp(-jnp.abs(x)))


def _cnn_expmart_kernel(x_ref, w_in, b_in, w_mid, b_mid, w_out, b_out, o_ref):
    # x_ref : (C_in, L_TILE)         lane-dense activation tile (positions on lanes)
    # w_*   : (C_out, C_in)          squeezed PyTorch Conv1d weight (torch orientation)
    # b_*   : (C_out, 1)             broadcast along lanes
    # o_ref : (num_outputs, L_TILE)  lane-dense output tile
    h = x_ref[...].astype(jnp.float32)
    h = _softplus(jnp.dot(w_in[...], h, preferred_element_type=jnp.float32) + b_in[...])
    for i in range(w_mid.shape[0]):  # 5 hidden->hidden layers, statically unrolled
        h = _softplus(jnp.dot(w_mid[i], h, preferred_element_type=jnp.float32) + b_mid[i])
    out = jnp.dot(w_out[...], h, preferred_element_type=jnp.float32) + b_out[...]
    o_ref[...] = out.astype(o_ref.dtype)


def cnn_expmart_forward(x_ncw, params, *, l_tile=512):
    """x_ncw: (N, C_in, L) float32 (PyTorch NCW).  Returns (N, num_outputs, L)."""
    w_in, b_in, w_mid, b_mid, w_out, b_out = params
    N, C, L = x_ncw.shape
    hidden = w_in.shape[0]
    num_outputs = w_out.shape[0]
    n_mid = w_mid.shape[0]

    # Lane-dense position tile: multiple of 128, capped for tiny inputs so the grid
    # keeps >= N steps (megacore/TC sharding comes from the N axis as well).
    l_tile = max(128, (l_tile // 128) * 128)
    l_pad = pl.cdiv(L, 128) * 128
    l_tile = min(l_tile, l_pad)
    l_pad = pl.cdiv(l_pad, l_tile) * l_tile
    if l_pad != L:
        # Pad positions up to the tile size; padded lanes are computed on garbage
        # (independent per position) and sliced off at the end.
        x_ncw = jnp.pad(x_ncw, ((0, 0), (0, 0), (0, l_pad - L)))

    grid = (N, l_pad // l_tile)

    # Advisory cost model for XLA scheduling (kernel is transcendental-bound).
    pos = N * l_pad
    flops = 2 * pos * (C * hidden + n_mid * hidden * hidden + hidden * num_outputs)
    transcendentals = 2 * pos * hidden * (1 + n_mid)  # exp + log1p per softplus element
    weight_bytes = sum(int(a.size) * a.dtype.itemsize for a in params)
    bytes_accessed = int(x_ncw.size) * 4 + pos * num_outputs * 4 + weight_bytes

    def wspec2(shape):
        return pl.BlockSpec(shape, lambda n, l: (0, 0))

    def wspec3(shape):
        return pl.BlockSpec(shape, lambda n, l: (0, 0, 0))

    out = pl.pallas_call(
        _cnn_expmart_kernel,
        out_shape=jax.ShapeDtypeStruct((N, num_outputs, l_pad), jnp.float32),
        grid_spec=pltpu.PrefetchScalarGridSpec(
            num_scalar_prefetch=0,
            grid=grid,
            in_specs=[
                pl.BlockSpec((None, C, l_tile), lambda n, l: (n, 0, l)),
                wspec2(w_in.shape), wspec2(b_in.shape),
                wspec3(w_mid.shape), wspec3(b_mid.shape),
                wspec2(w_out.shape), wspec2(b_out.shape),
            ],
            out_specs=pl.BlockSpec((None, num_outputs, l_tile),
                                   lambda n, l: (n, 0, l)),
        ),
        compiler_params=pltpu.CompilerParams(
            dimension_semantics=("parallel", "parallel")),
        cost_estimate=pl.CostEstimate(
            flops=flops, transcendentals=transcendentals,
            bytes_accessed=bytes_accessed),
    )(x_ncw, w_in, b_in, w_mid, b_mid, w_out, b_out)

    return out[:, :, :L]


def init_params(key, input_size, hidden_size, num_outputs, n_mid=5):
    """Deterministic init mimicking PyTorch Conv1d default U(-1/sqrt(fan_in), ...).
    Weights are stored as (C_out, C_in) == a squeezed torch Conv1d weight (real torch
    weights map via weight.squeeze(-1)); biases as (C_out, 1).
    Packed as (w_in, b_in, w_mid[5], b_mid[5], w_out, b_out)."""
    def one(k, cin, cout):
        kw, kb = jax.random.split(k)
        bound = 1.0 / jnp.sqrt(float(cin))
        w = jax.random.uniform(kw, (cout, cin), jnp.float32, -bound, bound)
        b = jax.random.uniform(kb, (cout, 1), jnp.float32, -bound, bound)
        return w, b

    keys = jax.random.split(key, n_mid + 2)
    w_in, b_in = one(keys[0], input_size, hidden_size)
    mids = [one(keys[1 + i], hidden_size, hidden_size) for i in range(n_mid)]
    w_mid = jnp.stack([w for w, _ in mids])
    b_mid = jnp.stack([b for _, b in mids])
    w_out, b_out = one(keys[-1], hidden_size, num_outputs)
    return (w_in, b_in, w_mid, b_mid, w_out, b_out)


def _softplus_ref(x):
    # Exact torch.nn.Softplus(beta=1, threshold=20) formula.
    return jnp.where(x > 20.0, x, jnp.log1p(jnp.exp(jnp.minimum(x, 20.0))))


def _reference_forward(x_ncw, params):
    # Pure-JAX reference (pointwise conv == per-position matmul), NCW throughout.
    w_in, b_in, w_mid, b_mid, w_out, b_out = params

    def conv(h, w, b):
        return jnp.einsum('oc,ncl->nol', w, h) + b[None]

    h = _softplus_ref(conv(x_ncw, w_in, b_in))
    for i in range(w_mid.shape[0]):
        h = _softplus_ref(conv(h, w_mid[i], b_mid[i]))
    return conv(h, w_out, b_out)


if __name__ == "__main__":
    input_size, hidden_size, num_outputs = 4, 32, 1
    batch, length = 2, 16

    key = jax.random.PRNGKey(0)
    kx, kp = jax.random.split(key)
    x = jax.random.normal(kx, (batch, input_size, length), jnp.float32)
    params = init_params(kp, input_size, hidden_size, num_outputs)

    out = jax.block_until_ready(cnn_expmart_forward(x, params))

    ref = _reference_forward(x, params)
    assert out.shape == (batch, num_outputs, length), out.shape
    assert jnp.allclose(out, ref, atol=1e-5, rtol=1e-5), \
        float(jnp.max(jnp.abs(out - ref)))

    print("KERNEL_OK")
</pallas_src>

<mosaic_0001>
module attributes {stable_mosaic.version = 11 : i64} {
  func.func @_cnn_expmart_kernel(%arg0: i32, %arg1: i32, %arg2: memref<1x4x128xf32, #tpu.memory_space<vmem>>, %arg3: memref<32x4xf32, #tpu.memory_space<vmem>>, %arg4: memref<32x1xf32, #tpu.memory_space<vmem>>, %arg5: memref<5x32x32xf32, #tpu.memory_space<vmem>>, %arg6: memref<5x32x1xf32, #tpu.memory_space<vmem>>, %arg7: memref<1x32xf32, #tpu.memory_space<vmem>>, %arg8: memref<1x1xf32, #tpu.memory_space<vmem>>, %arg9: memref<1x1x128xf32, #tpu.memory_space<vmem>>) attributes {dimension_semantics = [#tpu.dimension_semantics<parallel>, #tpu.dimension_semantics<parallel>], iteration_bounds = array<i64: 2, 1>, scalar_prefetch = 0 : i64, scratch_operands = 0 : i64, tpu.core_type = #tpu.core_type<tc>, window_params = [{transform_indices = @transform_0, window_bounds = array<i64: 1, 4, 128>}, {pipeline_mode = #tpu.pipeline_mode<synchronous>, transform_indices = @transform_1, window_bounds = array<i64: 32, 4>}, {pipeline_mode = #tpu.pipeline_mode<synchronous>, transform_indices = @transform_2, window_bounds = array<i64: 32, 1>}, {pipeline_mode = #tpu.pipeline_mode<synchronous>, transform_indices = @transform_3, window_bounds = array<i64: 5, 32, 32>}, {pipeline_mode = #tpu.pipeline_mode<synchronous>, transform_indices = @transform_4, window_bounds = array<i64: 5, 32, 1>}, {pipeline_mode = #tpu.pipeline_mode<synchronous>, transform_indices = @transform_5, window_bounds = array<i64: 1, 32>}, {pipeline_mode = #tpu.pipeline_mode<synchronous>, transform_indices = @transform_6, window_bounds = array<i64: 1, 1>}, {transform_indices = @transform_7, window_bounds = array<i64: 1, 1, 128>}]} {
    %c0 = arith.constant 0 : index
    %c0_0 = arith.constant 0 : index
    %c0_1 = arith.constant 0 : index
    %0 = vector.load %arg2[%c0, %c0_0, %c0_1] : memref<1x4x128xf32, #tpu.memory_space<vmem>>, vector<1x4x128xf32>
    %1 = vector.shape_cast %0 : vector<1x4x128xf32> to vector<4x128xf32>
    %c0_2 = arith.constant 0 : index
    %c0_3 = arith.constant 0 : index
    %2 = vector.load %arg3[%c0_2, %c0_3] : memref<32x4xf32, #tpu.memory_space<vmem>>, vector<32x4xf32>
    %cst = arith.constant dense<0.000000e+00> : vector<32x128xf32>
    %3 = tpu.matmul %2, %1, %cst {dimension_numbers = #tpu.dot_dimension_numbers<[1], [0], [0], [1], [0, 0, 1, 1], [], []>} : vector<32x4xf32>, vector<4x128xf32>, vector<32x128xf32> -> vector<32x128xf32>
    %c0_4 = arith.constant 0 : index
    %c0_5 = arith.constant 0 : index
    %4 = vector.load %arg4[%c0_4, %c0_5] : memref<32x1xf32, #tpu.memory_space<vmem>>, vector<32x1xf32>
    %5 = vector.broadcast %4 : vector<32x1xf32> to vector<32x128xf32>
    %6 = arith.addf %3, %5 : vector<32x128xf32>
    %cst_6 = arith.constant 0.000000e+00 : f32
    %7 = vector.broadcast %cst_6 : f32 to vector<32x128xf32>
    %8 = arith.maximumf %6, %7 : vector<32x128xf32>
    %9 = math.absf %6 : vector<32x128xf32>
    %cst_7 = arith.constant 0.000000e+00 : f32
    %10 = vector.broadcast %cst_7 : f32 to vector<32x128xf32>
    %11 = arith.subf %10, %9 : vector<32x128xf32>
    %12 = math.exp %11 : vector<32x128xf32>
    %13 = math.log1p %12 : vector<32x128xf32>
    %14 = arith.addf %8, %13 : vector<32x128xf32>
    %c0_8 = arith.constant 0 : index
    %c0_9 = arith.constant 0 : index
    %c0_10 = arith.constant 0 : index
    %15 = vector.load %arg5[%c0_8, %c0_9, %c0_10] : memref<5x32x32xf32, #tpu.memory_space<vmem>>, vector<1x32x32xf32>
    %16 = vector.shape_cast %15 : vector<1x32x32xf32> to vector<32x32xf32>
    %cst_11 = arith.constant dense<0.000000e+00> : vector<32x128xf32>
    %17 = tpu.matmul %16, %14, %cst_11 {dimension_numbers = #tpu.dot_dimension_numbers<[1], [0], [0], [1], [0, 0, 1, 1], [], []>} : vector<32x32xf32>, vector<32x128xf32>, vector<32x128xf32> -> vector<32x128xf32>
    %c0_12 = arith.constant 0 : index
    %c0_13 = arith.constant 0 : index
    %c0_14 = arith.constant 0 : index
    %18 = vector.load %arg6[%c0_12, %c0_13, %c0_14] : memref<5x32x1xf32, #tpu.memory_space<vmem>>, vector<1x32x1xf32>
    %19 = vector.shape_cast %18 : vector<1x32x1xf32> to vector<32x1xf32>
    %20 = vector.broadcast %19 : vector<32x1xf32> to vector<32x128xf32>
    %21 = arith.addf %17, %20 : vector<32x128xf32>
    %cst_15 = arith.constant 0.000000e+00 : f32
    %22 = vector.broadcast %cst_15 : f32 to vector<32x128xf32>
    %23 = arith.maximumf %21, %22 : vector<32x128xf32>
    %24 = math.absf %21 : vector<32x128xf32>
    %cst_16 = arith.constant 0.000000e+00 : f32
    %25 = vector.broadcast %cst_16 : f32 to vector<32x128xf32>
    %26 = arith.subf %25, %24 : vector<32x128xf32>
    %27 = math.exp %26 : vector<32x128xf32>
    %28 = math.log1p %27 : vector<32x128xf32>
    %29 = arith.addf %23, %28 : vector<32x128xf32>
    %c1 = arith.constant 1 : index
    %c0_17 = arith.constant 0 : index
    %c0_18 = arith.constant 0 : index
    %30 = vector.load %arg5[%c1, %c0_17, %c0_18] : memref<5x32x32xf32, #tpu.memory_space<vmem>>, vector<1x32x32xf32>
    %31 = vector.shape_cast %30 : vector<1x32x32xf32> to vector<32x32xf32>
    %cst_19 = arith.constant dense<0.000000e+00> : vector<32x128xf32>
    %32 = tpu.matmul %31, %29, %cst_19 {dimension_numbers = #tpu.dot_dimension_numbers<[1], [0], [0], [1], [0, 0, 1, 1], [], []>} : vector<32x32xf32>, vector<32x128xf32>, vector<32x128xf32> -> vector<32x128xf32>
    %c1_20 = arith.constant 1 : index
    %c0_21 = arith.constant 0 : index
    %c0_22 = arith.constant 0 : index
    %33 = vector.load %arg6[%c1_20, %c0_21, %c0_22] : memref<5x32x1xf32, #tpu.memory_space<vmem>>, vector<1x32x1xf32>
    %34 = vector.shape_cast %33 : vector<1x32x1xf32> to vector<32x1xf32>
    %35 = vector.broadcast %34 : vector<32x1xf32> to vector<32x128xf32>
    %36 = arith.addf %32, %35 : vector<32x128xf32>
    %cst_23 = arith.constant 0.000000e+00 : f32
    %37 = vector.broadcast %cst_23 : f32 to vector<32x128xf32>
    %38 = arith.maximumf %36, %37 : vector<32x128xf32>
    %39 = math.absf %36 : vector<32x128xf32>
    %cst_24 = arith.constant 0.000000e+00 : f32
    %40 = vector.broadcast %cst_24 : f32 to vector<32x128xf32>
    %41 = arith.subf %40, %39 : vector<32x128xf32>
    %42 = math.exp %41 : vector<32x128xf32>
    %43 = math.log1p %42 : vector<32x128xf32>
    %44 = arith.addf %38, %43 : vector<32x128xf32>
    %c2 = arith.constant 2 : index
    %c0_25 = arith.constant 0 : index
    %c0_26 = arith.constant 0 : index
    %45 = vector.load %arg5[%c2, %c0_25, %c0_26] : memref<5x32x32xf32, #tpu.memory_space<vmem>>, vector<1x32x32xf32>
    %46 = vector.shape_cast %45 : vector<1x32x32xf32> to vector<32x32xf32>
    %cst_27 = arith.constant dense<0.000000e+00> : vector<32x128xf32>
    %47 = tpu.matmul %46, %44, %cst_27 {dimension_numbers = #tpu.dot_dimension_numbers<[1], [0], [0], [1], [0, 0, 1, 1], [], []>} : vector<32x32xf32>, vector<32x128xf32>, vector<32x128xf32> -> vector<32x128xf32>
    %c2_28 = arith.constant 2 : index
    %c0_29 = arith.constant 0 : index
    %c0_30 = arith.constant 0 : index
    %48 = vector.load %arg6[%c2_28, %c0_29, %c0_30] : memref<5x32x1xf32, #tpu.memory_space<vmem>>, vector<1x32x1xf32>
    %49 = vector.shape_cast %48 : vector<1x32x1xf32> to vector<32x1xf32>
    %50 = vector.broadcast %49 : vector<32x1xf32> to vector<32x128xf32>
    %51 = arith.addf %47, %50 : vector<32x128xf32>
    %cst_31 = arith.constant 0.000000e+00 : f32
    %52 = vector.broadcast %cst_31 : f32 to vector<32x128xf32>
    %53 = arith.maximumf %51, %52 : vector<32x128xf32>
    %54 = math.absf %51 : vector<32x128xf32>
    %cst_32 = arith.constant 0.000000e+00 : f32
    %55 = vector.broadcast %cst_32 : f32 to vector<32x128xf32>
    %56 = arith.subf %55, %54 : vector<32x128xf32>
    %57 = math.exp %56 : vector<32x128xf32>
    %58 = math.log1p %57 : vector<32x128xf32>
    %59 = arith.addf %53, %58 : vector<32x128xf32>
    %c3 = arith.constant 3 : index
    %c0_33 = arith.constant 0 : index
    %c0_34 = arith.constant 0 : index
    %60 = vector.load %arg5[%c3, %c0_33, %c0_34] : memref<5x32x32xf32, #tpu.memory_space<vmem>>, vector<1x32x32xf32>
    %61 = vector.shape_cast %60 : vector<1x32x32xf32> to vector<32x32xf32>
    %cst_35 = arith.constant dense<0.000000e+00> : vector<32x128xf32>
    %62 = tpu.matmul %61, %59, %cst_35 {dimension_numbers = #tpu.dot_dimension_numbers<[1], [0], [0], [1], [0, 0, 1, 1], [], []>} : vector<32x32xf32>, vector<32x128xf32>, vector<32x128xf32> -> vector<32x128xf32>
    %c3_36 = arith.constant 3 : index
    %c0_37 = arith.constant 0 : index
    %c0_38 = arith.constant 0 : index
    %63 = vector.load %arg6[%c3_36, %c0_37, %c0_38] : memref<5x32x1xf32, #tpu.memory_space<vmem>>, vector<1x32x1xf32>
    %64 = vector.shape_cast %63 : vector<1x32x1xf32> to vector<32x1xf32>
    %65 = vector.broadcast %64 : vector<32x1xf32> to vector<32x128xf32>
    %66 = arith.addf %62, %65 : vector<32x128xf32>
    %cst_39 = arith.constant 0.000000e+00 : f32
    %67 = vector.broadcast %cst_39 : f32 to vector<32x128xf32>
    %68 = arith.maximumf %66, %67 : vector<32x128xf32>
    %69 = math.absf %66 : vector<32x128xf32>
    %cst_40 = arith.constant 0.000000e+00 : f32
    %70 = vector.broadcast %cst_40 : f32 to vector<32x128xf32>
    %71 = arith.subf %70, %69 : vector<32x128xf32>
    %72 = math.exp %71 : vector<32x128xf32>
    %73 = math.log1p %72 : vector<32x128xf32>
    %74 = arith.addf %68, %73 : vector<32x128xf32>
    %c4 = arith.constant 4 : index
    %c0_41 = arith.constant 0 : index
    %c0_42 = arith.constant 0 : index
    %75 = vector.load %arg5[%c4, %c0_41, %c0_42] : memref<5x32x32xf32, #tpu.memory_space<vmem>>, vector<1x32x32xf32>
    %76 = vector.shape_cast %75 : vector<1x32x32xf32> to vector<32x32xf32>
    %cst_43 = arith.constant dense<0.000000e+00> : vector<32x128xf32>
    %77 = tpu.matmul %76, %74, %cst_43 {dimension_numbers = #tpu.dot_dimension_numbers<[1], [0], [0], [1], [0, 0, 1, 1], [], []>} : vector<32x32xf32>, vector<32x128xf32>, vector<32x128xf32> -> vector<32x128xf32>
    %c4_44 = arith.constant 4 : index
    %c0_45 = arith.constant 0 : index
    %c0_46 = arith.constant 0 : index
    %78 = vector.load %arg6[%c4_44, %c0_45, %c0_46] : memref<5x32x1xf32, #tpu.memory_space<vmem>>, vector<1x32x1xf32>
    %79 = vector.shape_cast %78 : vector<1x32x1xf32> to vector<32x1xf32>
    %80 = vector.broadcast %79 : vector<32x1xf32> to vector<32x128xf32>
    %81 = arith.addf %77, %80 : vector<32x128xf32>
    %cst_47 = arith.constant 0.000000e+00 : f32
    %82 = vector.broadcast %cst_47 : f32 to vector<32x128xf32>
    %83 = arith.maximumf %81, %82 : vector<32x128xf32>
    %84 = math.absf %81 : vector<32x128xf32>
    %cst_48 = arith.constant 0.000000e+00 : f32
    %85 = vector.broadcast %cst_48 : f32 to vector<32x128xf32>
    %86 = arith.subf %85, %84 : vector<32x128xf32>
    %87 = math.exp %86 : vector<32x128xf32>
    %88 = math.log1p %87 : vector<32x128xf32>
    %89 = arith.addf %83, %88 : vector<32x128xf32>
    %c0_49 = arith.constant 0 : index
    %c0_50 = arith.constant 0 : index
    %90 = vector.load %arg7[%c0_49, %c0_50] : memref<1x32xf32, #tpu.memory_space<vmem>>, vector<1x32xf32>
    %cst_51 = arith.constant dense<0.000000e+00> : vector<1x128xf32>
    %91 = tpu.matmul %90, %89, %cst_51 {dimension_numbers = #tpu.dot_dimension_numbers<[1], [0], [0], [1], [0, 0, 1, 1], [], []>} : vector<1x32xf32>, vector<32x128xf32>, vector<1x128xf32> -> vector<1x128xf32>
    %c0_52 = arith.constant 0 : index
    %c0_53 = arith.constant 0 : index
    %92 = vector.load %arg8[%c0_52, %c0_53] : memref<1x1xf32, #tpu.memory_space<vmem>>, vector<1x1xf32>
    %93 = vector.broadcast %92 : vector<1x1xf32> to vector<1x128xf32>
    %94 = arith.addf %91, %93 : vector<1x128xf32>
    %c0_54 = arith.constant 0 : index
    %c0_55 = arith.constant 0 : index
    %c0_56 = arith.constant 0 : index
    %95 = vector.load %arg9[%c0_54, %c0_55, %c0_56] : memref<1x1x128xf32, #tpu.memory_space<vmem>>, vector<1x1x128xf32>
    %96 = vector.shape_cast %95 : vector<1x1x128xf32> to vector<1x128xf32>
    %97 = vector.shape_cast %94 : vector<1x128xf32> to vector<1x1x128xf32>
    tpu.vector_store %arg9[%c0_54, %c0_55, %c0_56], %97 {strides = array<i32>} : memref<1x1x128xf32, #tpu.memory_space<vmem>>, vector<1x1x128xf32>,
    return
  }
  func.func @transform_0(%arg0: i32, %arg1: i32) -> (i32, i32, i32) {
    %c0_i32 = arith.constant 0 : i32
    %c0_i32_0 = arith.constant 0 : i32
    return %arg0, %c0_i32, %arg1 : i32, i32, i32
  }
  func.func @transform_1(%arg0: i32, %arg1: i32) -> (i32, i32) {
    %c0_i32 = arith.constant 0 : i32
    %c0_i32_0 = arith.constant 0 : i32
    %c0_i32_1 = arith.constant 0 : i32
    return %c0_i32, %c0_i32_0 : i32, i32
  }
  func.func @transform_2(%arg0: i32, %arg1: i32) -> (i32, i32) {
    %c0_i32 = arith.constant 0 : i32
    %c0_i32_0 = arith.constant 0 : i32
    %c0_i32_1 = arith.constant 0 : i32
    return %c0_i32, %c0_i32_0 : i32, i32
  }
  func.func @transform_3(%arg0: i32, %arg1: i32) -> (i32, i32, i32) {
    %c0_i32 = arith.constant 0 : i32
    %c0_i32_0 = arith.constant 0 : i32
    %c0_i32_1 = arith.constant 0 : i32
    %c0_i32_2 = arith.constant 0 : i32
    return %c0_i32, %c0_i32_0, %c0_i32_1 : i32, i32, i32
  }
  func.func @transform_4(%arg0: i32, %arg1: i32) -> (i32, i32, i32) {
    %c0_i32 = arith.constant 0 : i32
    %c0_i32_0 = arith.constant 0 : i32
    %c0_i32_1 = arith.constant 0 : i32
    %c0_i32_2 = arith.constant 0 : i32
    return %c0_i32, %c0_i32_0, %c0_i32_1 : i32, i32, i32
  }
  func.func @transform_5(%arg0: i32, %arg1: i32) -> (i32, i32) {
    %c0_i32 = arith.constant 0 : i32
    %c0_i32_0 = arith.constant 0 : i32
    %c0_i32_1 = arith.constant 0 : i32
    return %c0_i32, %c0_i32_0 : i32, i32
  }
  func.func @transform_6(%arg0: i32, %arg1: i32) -> (i32, i32) {
    %c0_i32 = arith.constant 0 : i32
    %c0_i32_0 = arith.constant 0 : i32
    %c0_i32_1 = arith.constant 0 : i32
    return %c0_i32, %c0_i32_0 : i32, i32
  }
  func.func @transform_7(%arg0: i32, %arg1: i32) -> (i32, i32, i32) {
    %c0_i32 = arith.constant 0 : i32
    %c0_i32_0 = arith.constant 0 : i32
    return %arg0, %c0_i32, %arg1 : i32, i32, i32
  }
}

</mosaic_0001>

<bundles_post_ra>
// kernel: tpu_custom_call.1
= control target key start
LH: loop header
LB: loop body
LE: loop exit
PB: predicated region body
PF: predicated region fallthrough
CT: control target
= control target key end

     0   :  { %s1889_s0 = inlined_call_operand.vmem [shape: f32[2,4,128], index: 0, kind: input, shape index: {}]   ;;  %s1890_s1 = inlined_call_operand.vmem [shape: f32[32,4], index: 1, kind: input, shape index: {}]   ;;  %s1891_s2 = inlined_call_operand.vmem [shape: f32[32,1], index: 2, kind: input, shape index: {}]   ;;  %s1892_s3 = inlined_call_operand.vmem [shape: f32[5,32,32], index: 3, kind: input, shape index: {}]   ;;  %s1893_s4 = inlined_call_operand.vmem [shape: f32[5,32,1], index: 4, kind: input, shape index: {}]   ;;  %s1894_s5 = inlined_call_operand.vmem [shape: f32[1,32], index: 5, kind: input, shape index: {}]   ;;  %s1895_s6 = inlined_call_operand.<no memory space> [shape: f32[1,1], index: 6, kind: input, shape index: {}]   ;;  %s1896_s7 = inlined_call_operand.hbm [shape: f32[2,1,128], index: 7, kind: output, shape index: {}]  }
   0x1   :  { %v12_v0 = vstv %s1895_s6 }
   0x2   :  { %13 = vst [vmem:[#allocation2] sm:$0x1] %v12_v0 }
   0x3   :  { %14 = vsyncpa [#allocation4], 0 }
   0x4   :  { %16 = vsyncpa [#allocation4 + $0x1], 0  ;;  %s1552_s26 = smov 0   ;;  %s1554_s27 = smov 0  }
   0x5   :  { %s1556_s28 = smov 0   ;;  %s1558_s29 = smov 0  }
   0x6   :  { %s1560_s30 = smov 0   ;;  %s1562_s8 = smov 0  }
   0x7 LB: > { %s1202_s6 = sadd.s32 4294967295, %s1506_s8   ;;  %s1203_s9 = sadd.s32 4294967294, %s1506_s8   ;;  %s1506_s8 = sphi %s1562_s8, %s22_s8   ;;  %s1502_s30 = sphi %s1560_s30, %s1903_s30   ;;  %s1498_s29 = sphi %s1558_s29, %s1902_s29   ;;  %s1494_s28 = sphi %s1556_s28, %s1901_s28   ;;  %s1490_s27 = sphi %s1554_s27, %s1900_s27   ;;  %s1486_s26 = sphi %s1552_s26, %s1899_s26  }
   0x8   : > { %s34_s10 = sadd.s32 1, %s1502_s30  ;;  %s197_s11 = sadd.s32 1, %s1494_s28 }
   0x9   : > { %p36_p0 = scmp.ge.s32.totalorder %s34_s10, 2  ;;  %p207_p1 = scmp.ne.s32.totalorder %s1494_s28, %s1490_s27 }
   0xa   : > { %p208_p2 = scmp.eq.s32.totalorder %s1202_s6, 1  ;;  %p213_p3 = scmp.ne.s32.totalorder %s1490_s27, %s1486_s26 }
   0xb   : > { %s1905_s10 = smov (%p36_p0, %s34_s10), 0  ;;  %p214_p5 = scmp.eq.s32.totalorder %s1203_s9, 1 }
   0xc   : > { %p1592_p4 = por %p208_p2, %p207_p1  ;;  %s192_s13 = ssub.s32 %s1502_s30, %s1905_s10 }
   0xd   : > { %p1206_p6 = scmp.ge.s32.totalorder %s1506_s8, 1  ;;  %p195_p7 = scmp.eq.s32.totalorder %s192_s13, 0 }
   0xe   : > { %p1599_p8 = por %p214_p5, %p213_p3  ;;  %p260_p9 = scmp.lt.s32.totalorder %s1506_s8, 3 }
   0xf   : > { %s1605_s15 = scalar_select %p195_p7, %s1494_s28, %s197_s11  }
  0x10   : > { %p261_p10 = pnand %p1206_p6, %p260_p9 }
  0x11   : > { %p293_p11 = scmp.lt.s32.totalorder (!%p261_p10), %s1498_s29, 1  ;;  %s1448_s18 = scalar_lea.hbm (!%p261_p10), %s1896_s7, 2 }
  0x12   : > { %264 = sbr.rel (%p261_p10) target bundleno = 1274 (0x4fa), region = 48 }
  0x17   : > { %v308_v1 = vld [vmem:[%s1891_s2 + $0x18] sm:$0xff]  ;;  %v306_v2 = vld [vmem:[%s1891_s2 + $0x8] sm:$0xff]  ;;  %v1508_v3 = vmov 0   ;;  %s294_s20 = scalar_select %p293_p11, %s1498_s29, 1  ;;  %vm342_vm0 = vcmask 1043456   ;;  %v301_v4 = vld [vmem:[%s1890_s1] sm:$0xff] }
  0x18   : > { %1330 = vset.pattern.permute.xlu1 %v1508_v3  ;;  %1329 = vset.pattern.permute.xlu0 %v1508_v3  ;;  %vm329_vm1 = vcmask 31744   ;;  %v304_v5 = vld [vmem:[%s1890_s1 + $0x18] sm:$0xff]  ;;  %v307_v7 = vld [vmem:[%s1891_s2 + $0x10] sm:$0xff]  ;;  %v305_v8 = vld [vmem:[%s1891_s2] sm:$0xff]  ;;  %vm463_vm6 = vcmask 261120  }
  0x19   : > { %326 = vperm.xlu0 %1329, %v308_v1   ;;  %316 = vperm.xlu1 %1330, %v306_v2   ;;  %s1207_s21 = sshll.u32 %s294_s20, 2  ;;  %v302_v9 = vld [vmem:[%s1890_s1 + $0x8] sm:$0xff]  ;;  %v439_v11 = vld [vmem:[%s1893_s4] sm:$0xff]  ;;  %v303_v12 = vld [vmem:[%s1890_s1 + $0x10] sm:$0xff] }
  0x1a   : > { %1331 = vset.pattern.permute.xlu2 %v1508_v3  ;;  %s299_s24 = scalar_lea.vmem %s1889_s0, %s1207_s21  ;;  %v440_v10 = vld [vmem:[%s1893_s4 + $0x8] sm:$0xff]  ;;  %v1223_v13 = vld [vmem:[%s1893_s4 + $0x30] sm:$0xff]  ;;  %v1236_v15 = vld [vmem:[%s1893_s4 + $0x58] sm:$0xff]  ;;  %s291_s21 = sand.u32 1, %s1490_s27  }
  0x1b   : > { %v300_v6 = vld [vmem:[%s299_s24] sm:$0xf]  ;;  %v1222_v14 = vld [vmem:[%s1893_s4 + $0x28] sm:$0xff]  ;;  %v1235_v16 = vld [vmem:[%s1893_s4 + $0x50] sm:$0xff]  ;;  %s1131_s24 = scalar_lea.hbm %s1896_s7, %s1498_s29  ;;  %s292_s25 = scalar_lea.vmem [#allocation3], %s291_s21 }
  0x1c   : > { %1208 = vmatpush.msk.msra.mxu0 %vm342_vm0, %v300_v6  ;;  %1268 = vmatpush.msk.msra.mxu2 %vm342_vm0, %v300_v6  ;;  %v1233_v17 = vld [vmem:[%s1893_s4 + $0x40] sm:$0xff]  ;;  %v1248_v18 = vld [vmem:[%s1893_s4 + $0x78] sm:$0xff]  ;;  %v1246_v19 = vld [vmem:[%s1893_s4 + $0x68] sm:$0xff]  ;;  %s1133_s6 = sshll.u32 %s292_s25, 4  ;;  %s1135_s9 = sshll.u32 %s1131_s24, 4  ;;  %s1134_s6 = int_to_ptr.vmem [resolvable:$true] %s1133_s6  ;;  %s1136_s9 = int_to_ptr.hbm [resolvable:$true] %s1135_s9 }
  0x1d   : > { %1209 = vmatmul.msk.f32.vlgmr.msra.gmra.mxu0 %vm329_vm1, %v301_v4  ;;  %1212 = vmatmul.msk.f32.vlgmr.msra.gmra.mxu2 %vm329_vm1, %v304_v5  ;;  %v1245_v20 = vld [vmem:[%s1893_s4 + $0x60] sm:$0xff]  ;;  %v1259_v21 = vld [vmem:[%s1893_s4 + $0x90] sm:$0xff]  ;;  %v1258_v22 = vld [vmem:[%s1893_s4 + $0x88] sm:$0xff]  ;;  %s1122_s11 = scalar_lea.sflag [#allocation4], %s291_s21  ;;  %s1442_s13 = sshra.s32 %s1136_s9, 4  ;;  %s1443_s13 = int_to_ptr.hbm [resolvable:$true] %s1442_s13 }
  0x1e   : > { %v1090_v23 = vld [vmem:[#allocation2] sm:$0x1]  ;;  %v442_v28 = vld [vmem:[%s1893_s4 + $0x18] sm:$0xff]  ;;  %v441_v36 = vld [vmem:[%s1893_s4 + $0x10] sm:$0xff]  ;;  %s1444_s16 = scalar_lea.hbm %s1443_s13, 1  ;;  %p1449_p1 = scmp.lt.s32.totalorder %s1443_s13, %s1896_s7 }
  0x1f   : > { %460 = vperm.xlu2 %1331, %v442_v28   ;;  %v1224_v48 = vld [vmem:[%s1893_s4 + $0x38] sm:$0xff]  ;;  %v1221_v58 = vld [vmem:[%s1893_s4 + $0x20] sm:$0xff]  ;;  %p1445_p12 = scmp.ne.s32.totalorder %s1443_s13, %s1444_s16  ;;  %p1450_p2 = scmp.lt.s32.totalorder %s1448_s18, %s1444_s16 }
  0x21   : > { %321 = vperm.xlu0 %1329, %v307_v7   ;;  %311 = vperm.xlu1 %1330, %v305_v8   ;;  %v1234_v7 = vld [vmem:[%s1893_s4 + $0x48] sm:$0xff]  ;;  %p1446_p13 = pnand %p1445_p12, %p1592_p4  ;;  %p1451_p3 = por %p1450_p2, %p1449_p1 }
  0x23   : > { %p1447_p0 = pneg %p1446_p13 }
  0x25   : > { %1210 = vmatmul.msk.f32.gmra.mxu0 %vm329_vm1, %v302_v9  ;;  %p1452_p5 = pnand %p1451_p3, %p1447_p0 }
  0x27   : > { %455 = vperm.xlu2 %1331, %v441_v36   ;;  %v435_v36 = vld [vmem:[%s1892_s3] sm:$0xff] }
  0x29   : > { %450 = vperm.xlu0 %1329, %v440_v10   ;;  %445 = vperm.xlu1 %1330, %v439_v11  }
  0x2d   : > { %1211 = vmatmul.msk.f32.gmra.mxu0 %vm329_vm1, %v303_v12 }
  0x2f   : > { %592 = vperm.xlu2 %1331, %v1224_v48  }
  0x31   : > { %587 = vperm.xlu0 %1329, %v1223_v13   ;;  %582 = vperm.xlu1 %1330, %v1222_v14  }
  0x37   : > { %577 = vperm.xlu2 %1331, %v1221_v58  }
  0x39   : > { %723 = vperm.xlu0 %1329, %v1236_v15   ;;  %718 = vperm.xlu1 %1330, %v1235_v16  }
  0x3f   : > { %713 = vperm.xlu2 %1331, %v1234_v7  }
  0x41   : > { %708 = vperm.xlu0 %1329, %v1233_v17   ;;  %854 = vperm.xlu1 %1330, %v1248_v18  }
  0x49   : > { %844 = vperm.xlu0 %1329, %v1246_v19   ;;  %839 = vperm.xlu1 %1330, %v1245_v20  }
  0x51   : > { %980 = vperm.xlu0 %1329, %v1259_v21   ;;  %975 = vperm.xlu1 %1330, %v1258_v22  }
  0x59   : > { %1093 = vperm.xlu0 %1329, %v1090_v23  }
  0x8b   : > { %v317_v24 = vpop.permute.xlu1 %316  ;;  %v327_v29 = vpop.permute.xlu0 %326 }
  0x93   : > { %v312_v26 = vpop.permute.xlu1 %311  ;;  %v322_v44 = vpop.permute.xlu0 %321 }
  0x9a   : > { %v363_v25 = vpop.f32.mrf.mxu0 }
  0x9b   : > { %v1676_v27 = vadd.f32 %v363_v25, %v312_v26  ;;  %v451_v48 = vpop.permute.xlu0 %450 }
  0x9d   : > { %v379_v31 = vand.u32 2147483647, %v1676_v27 }
  0x9f   : > { %v383_v37 = vsub.f32 0.0, %v379_v31 }
  0xa0   : > { %v372_v30 = vpop.f32.mrf.mxu2 }
  0xa1   : > { %v373_v32 = vadd.f32 %v372_v30, %v327_v29  ;;  %v387_v42 = vmul.f32 1.442695, %v383_v37  ;;  %v436_v37 = vld [vmem:[%s1892_s3 + $0x8] sm:$0xff] }
  0xa2   : > { %v366_v33 = vpop.f32.mrf.mxu0 }
  0xa3   : > { %v382_v34 = vand.u32 2147483647, %v373_v32  ;;  %v1682_v35 = vadd.f32 %v366_v33, %v317_v24  ;;  %v378_v1 = vmax.f32 %v373_v32, 0.0  ;;  %v1247_v24 = vld [vmem:[%s1893_s4 + $0x70] sm:$0xff]  ;;  %v375_v32 = vmax.f32 %v1676_v27, 0.0  ;;  %v1260_v27 = vld [vmem:[%s1893_s4 + $0x98] sm:$0xff] }
  0xa4   : > { %849 = vperm.xlu2 %1331, %v1247_v24  }
  0xa5   : > { %v386_v38 = vsub.f32 0.0, %v382_v34  ;;  %v380_v39 = vand.u32 2147483647, %v1682_v35  ;;  %v376_v29 = vmax.f32 %v1682_v35, 0.0  ;;  %v437_v35 = vld [vmem:[%s1892_s3 + $0x10] sm:$0xff] }
  0xa7   : > { %v393_v40 = vmul.f32 1.442695, %v386_v38  ;;  %v384_v41 = vsub.f32 0.0, %v380_v39  ;;  %v438_v38 = vld [vmem:[%s1892_s3 + $0x18] sm:$0xff]  ;;  %v1257_v39 = vld [vmem:[%s1893_s4 + $0x80] sm:$0xff] }
  0xa9   : > { %1332 = vpow2.f32 %v393_v40  ;;  %v389_v43 = vmul.f32 1.442695, %v384_v41  ;;  %v461_v40 = vpop.permute.xlu2 %460 }
  0xaa   : > { %v369_v45 = vpop.f32.mrf.mxu0 }
  0xab   : > { %1334 = vpow2.f32 %v389_v43  ;;  %v370_v46 = vadd.f32 %v369_v45, %v322_v44 }
  0xac   : > { %1336 = vpow2.f32 %v387_v42  ;;  %985 = vperm.xlu2 %1331, %v1260_v27   ;;  %v446_v42 = vpop.permute.xlu1 %445 }
  0xad   : > { %v381_v47 = vand.u32 2147483647, %v370_v46  ;;  %v377_v23 = vmax.f32 %v370_v46, 0.0 }
  0xaf   : > { %v1333_v49 = vpop.eup %1332  ;;  %v385_v50 = vsub.f32 0.0, %v381_v47 }
  0xb0   : > { %v422_v51 = vadd.f32 1.0, %v1333_v49  ;;  %v425_v54 = vmul.f32 -0.5, %v1333_v49  ;;  %v428_v59 = vand.u32 2147483647, %v1333_v49 }
  0xb1   : > { %v1335_v52 = vpop.eup %1334  ;;  %v391_v53 = vmul.f32 1.442695, %v385_v50  ;;  %v456_v44 = vpop.permute.xlu2 %455 }
  0xb2   : > { %1338 = vlog2.f32 %v422_v51  ;;  %v1337_v55 = vpop.eup %1336  ;;  %v404_v56 = vadd.f32 1.0, %v1335_v52  ;;  %v426_v57 = vadd.f32 1.0, %v425_v54  ;;  %vm429_vm2 = vcmp.lt.f32.partialorder %v428_v59, 0.0004427343 }
  0xb3   : > { %1340 = vpow2.f32 %v391_v53  ;;  %v395_v60 = vadd.f32 1.0, %v1337_v55  ;;  %v407_v5 = vmul.f32 -0.5, %v1335_v52  ;;  %v398_v8 = vmul.f32 -0.5, %v1337_v55 }
  0xb4   : > { %1342 = vlog2.f32 %v404_v56  ;;  %v427_v0 = vmul.f32 %v1333_v49, %v426_v57  ;;  %v410_v14 = vand.u32 2147483647, %v1335_v52  ;;  %v401_v18 = vand.u32 2147483647, %v1337_v55  ;;  %970 = vperm.xlu2 %1331, %v1257_v39  }
  0xb5   : > { %1344 = vlog2.f32 %v395_v60  ;;  %v408_v11 = vadd.f32 1.0, %v407_v5  ;;  %v399_v16 = vadd.f32 1.0, %v398_v8 }
  0xb6   : > { %vm411_vm4 = vcmp.lt.f32.partialorder %v410_v14, 0.0004427343  ;;  %vm402_vm5 = vcmp.lt.f32.partialorder %v401_v18, 0.0004427343 }
  0xb7   : > { %v409_v21 = vmul.f32 %v1335_v52, %v408_v11  ;;  %v400_v28 = vmul.f32 %v1337_v55, %v399_v16 }
  0xb8   : > { %v1339_v61 = vpop.eup %1338 }
  0xb9   : > { %v1341_v62 = vpop.eup %1340  ;;  %v424_v63 = vmul.f32 0.6931472, %v1339_v61 }
  0xba   : > { %v413_v2 = vadd.f32 1.0, %v1341_v62  ;;  %v416_v4 = vmul.f32 -0.5, %v1341_v62  ;;  %v1343_v9 = vpop.eup %1342  ;;  %v419_v13 = vand.u32 2147483647, %v1341_v62 }
  0xbb   : > { %v430_v3 = vsel %vm429_vm2, %v427_v0, %v424_v63  ;;  %v1345_v12 = vpop.eup %1344  ;;  %v406_v15 = vmul.f32 0.6931472, %v1343_v9 }
  0xbc   : > { %v434_v6 = vadd.f32 %v430_v3, %v378_v1  ;;  %1346 = vlog2.f32 %v413_v2  ;;  %v417_v10 = vadd.f32 1.0, %v416_v4  ;;  %v397_v22 = vmul.f32 0.6931472, %v1345_v12 }
  0xbd   : > { %vm420_vm3 = vcmp.lt.f32.partialorder %v419_v13, 0.0004427343  ;;  %v412_v26 = vsel %vm411_vm4, %v409_v21, %v406_v15 }
  0xbe   : > { %488 = vmatpush.msra.mxu1 %v434_v6  ;;  %1269 = vmatpush.msra.mxu3 %v434_v6  ;;  %v418_v20 = vmul.f32 %v1341_v62, %v417_v10  ;;  %v403_v31 = vsel %vm402_vm5, %v400_v28, %v397_v22  ;;  %v432_v33 = vadd.f32 %v412_v26, %v376_v29 }
  0xbf   : > { %v431_v34 = vadd.f32 %v403_v31, %v375_v32 }
  0xc2   : > { %v1347_v17 = vpop.eup %1346 }
  0xc3   : > { %v415_v19 = vmul.f32 0.6931472, %v1347_v17 }
  0xc5   : > { %v421_v25 = vsel %vm420_vm3, %v418_v20, %v415_v19 }
  0xc6   : > { %v433_v30 = vadd.f32 %v421_v25, %v377_v23 }
  0xc8   : > { %489 = vmatpush.msra.mxu1 %v433_v30  ;;  %1270 = vmatpush.msra.mxu3 %v433_v30 }
  0xca   : > { %490 = vmatpush.msra.mxu1 %v432_v33  ;;  %1271 = vmatpush.msra.mxu3 %v432_v33 }
  0xcc   : > { %491 = vmatpush.msra.mxu1 %v431_v34  ;;  %1272 = vmatpush.msra.mxu3 %v431_v34 }
  0xcd   : > { %1213 = vmatmul.msk.f32.vlgmr.msra.gmra.mxu1 %vm463_vm6, %v435_v36  ;;  %1215 = vmatmul.msk.f32.vlgmr.msra.gmra.mxu3 %vm463_vm6, %v437_v35 }
  0xd5   : > { %1214 = vmatmul.msk.f32.gmra.mxu1 %vm463_vm6, %v436_v37  ;;  %1216 = vmatmul.msk.f32.gmra.mxu3 %vm463_vm6, %v438_v38 }
 0x14a   : > { %v493_v41 = vpop.f32.mrf.mxu1 }
 0x14b   : > { %v1724_v43 = vadd.f32 %v493_v41, %v446_v42 }
 0x14d   : > { %v509_v45 = vand.u32 2147483647, %v1724_v43  ;;  %v505_v41 = vmax.f32 %v1724_v43, 0.0  ;;  %v1219_v43 = vld [vmem:[%s1892_s3 + $0x30] sm:$0xff] }
 0x14f   : > { %v513_v52 = vsub.f32 0.0, %v509_v45  ;;  %v1217_v45 = vld [vmem:[%s1892_s3 + $0x20] sm:$0xff] }
 0x150   : > { %v499_v46 = vpop.f32.mrf.mxu3 }
 0x151   : > { %v1727_v47 = vadd.f32 %v499_v46, %v456_v44  ;;  %v517_v57 = vmul.f32 1.442695, %v513_v52  ;;  %v1218_v46 = vld [vmem:[%s1892_s3 + $0x28] sm:$0xff] }
 0x152   : > { %v496_v49 = vpop.f32.mrf.mxu1 }
 0x153   : > { %v511_v50 = vand.u32 2147483647, %v1727_v47  ;;  %v1730_v51 = vadd.f32 %v496_v49, %v451_v48  ;;  %v507_v36 = vmax.f32 %v1727_v47, 0.0  ;;  %v1220_v47 = vld [vmem:[%s1892_s3 + $0x38] sm:$0xff]  ;;  %v593_v49 = vpop.permute.xlu2 %592 }
 0x155   : > { %v515_v53 = vsub.f32 0.0, %v511_v50  ;;  %v510_v54 = vand.u32 2147483647, %v1730_v51  ;;  %v506_v38 = vmax.f32 %v1730_v51, 0.0  ;;  %v583_v51 = vpop.permute.xlu1 %582 }
 0x157   : > { %v521_v55 = vmul.f32 1.442695, %v515_v53  ;;  %v514_v56 = vsub.f32 0.0, %v510_v54 }
 0x158   : > { %v502_v58 = vpop.f32.mrf.mxu3 }
 0x159   : > { %1348 = vpow2.f32 %v521_v55  ;;  %v519_v59 = vmul.f32 1.442695, %v514_v56  ;;  %v503_v60 = vadd.f32 %v502_v58, %v461_v40  ;;  %v588_v56 = vpop.permute.xlu0 %587 }
 0x15b   : > { %1350 = vpow2.f32 %v519_v59  ;;  %v512_v61 = vand.u32 2147483647, %v503_v60  ;;  %v508_v30 = vmax.f32 %v503_v60, 0.0  ;;  %v578_v52 = vpop.permute.xlu2 %577 }
 0x15c   : > { %1352 = vpow2.f32 %v517_v57 }
 0x15d   : > { %v516_v62 = vsub.f32 0.0, %v512_v61 }
 0x15f   : > { %v1349_v63 = vpop.eup %1348  ;;  %v523_v0 = vmul.f32 1.442695, %v516_v62 }
 0x160   : > { %v543_v3 = vadd.f32 1.0, %v1349_v63  ;;  %v546_v9 = vmul.f32 -0.5, %v1349_v63  ;;  %v549_v17 = vand.u32 2147483647, %v1349_v63 }
 0x161   : > { %v1351_v1 = vpop.eup %1350  ;;  %1354 = vpow2.f32 %v523_v0 }
 0x162   : > { %v1353_v2 = vpop.eup %1352  ;;  %v534_v4 = vadd.f32 1.0, %v1351_v1  ;;  %1356 = vlog2.f32 %v543_v3  ;;  %v537_v10 = vmul.f32 -0.5, %v1351_v1  ;;  %v547_v14 = vadd.f32 1.0, %v546_v9 }
 0x163   : > { %v525_v5 = vadd.f32 1.0, %v1353_v2  ;;  %v528_v12 = vmul.f32 -0.5, %v1353_v2  ;;  %v540_v22 = vand.u32 2147483647, %v1351_v1  ;;  %v531_v24 = vand.u32 2147483647, %v1353_v2 }
 0x164   : > { %1358 = vlog2.f32 %v534_v4  ;;  %v538_v20 = vadd.f32 1.0, %v537_v10  ;;  %v548_v28 = vmul.f32 %v1349_v63, %v547_v14  ;;  %vm550_vm8 = vcmp.lt.f32.partialorder %v549_v17, 0.0004427343 }
 0x165   : > { %1360 = vlog2.f32 %v525_v5  ;;  %v529_v23 = vadd.f32 1.0, %v528_v12  ;;  %vm541_vm9 = vcmp.lt.f32.partialorder %v540_v22, 0.0004427343  ;;  %vm532_vm10 = vcmp.lt.f32.partialorder %v531_v24, 0.0004427343 }
 0x166   : > { %v539_v33 = vmul.f32 %v1351_v1, %v538_v20 }
 0x167   : > { %v1355_v6 = vpop.eup %1354  ;;  %v530_v37 = vmul.f32 %v1353_v2, %v529_v23 }
 0x168   : > { %v552_v7 = vadd.f32 1.0, %v1355_v6  ;;  %v555_v8 = vmul.f32 -0.5, %v1355_v6  ;;  %v1357_v11 = vpop.eup %1356  ;;  %v558_v16 = vand.u32 2147483647, %v1355_v6 }
 0x169   : > { %v545_v19 = vmul.f32 0.6931472, %v1357_v11 }
 0x16a   : > { %1362 = vlog2.f32 %v552_v7  ;;  %v556_v13 = vadd.f32 1.0, %v555_v8  ;;  %v1359_v15 = vpop.eup %1358  ;;  %vm559_vm7 = vcmp.lt.f32.partialorder %v558_v16, 0.0004427343 }
 0x16b   : > { %v1361_v18 = vpop.eup %1360  ;;  %v536_v29 = vmul.f32 0.6931472, %v1359_v15  ;;  %v551_v32 = vsel %vm550_vm8, %v548_v28, %v545_v19 }
 0x16c   : > { %v557_v26 = vmul.f32 %v1355_v6, %v556_v13  ;;  %v527_v34 = vmul.f32 0.6931472, %v1361_v18  ;;  %v563_v39 = vadd.f32 %v551_v32, %v507_v36 }
 0x16d   : > { %v542_v27 = vsel %vm541_vm9, %v539_v33, %v536_v29 }
 0x16e   : > { %v533_v40 = vsel %vm532_vm10, %v530_v37, %v527_v34  ;;  %v562_v42 = vadd.f32 %v542_v27, %v506_v38 }
 0x16f   : > { %v561_v44 = vadd.f32 %v533_v40, %v505_v41 }
 0x170   : > { %v1363_v21 = vpop.eup %1362 }
 0x171   : > { %v554_v25 = vmul.f32 0.6931472, %v1363_v21 }
 0x173   : > { %v560_v31 = vsel %vm559_vm7, %v557_v26, %v554_v25 }
 0x174   : > { %v564_v35 = vadd.f32 %v560_v31, %v508_v30 }
 0x176   : > { %619 = vmatpush.msrb.mxu2 %v564_v35 }
 0x178   : > { %620 = vmatpush.msrb.mxu2 %v563_v39 }
 0x17a   : > { %621 = vmatpush.msrb.mxu2 %v562_v42 }
 0x17c   : > { %622 = vmatpush.msrb.mxu2 %v561_v44 }
 0x17d   : > { %1225 = vmatmul.msk.f32.vlgmr.msrb.gmra.mxu2 %vm463_vm6, %v1217_v45 }
 0x185   : > { %1226 = vmatmul.msk.f32.gmra.mxu2 %vm463_vm6, %v1218_v46 }
 0x18d   : > { %1227 = vmatmul.msk.f32.gmra.mxu2 %vm463_vm6, %v1219_v43 }
 0x195   : > { %1228 = vmatmul.msk.f32.gmra.mxu2 %vm463_vm6, %v1220_v47 }
 0x200   : > { %v624_v48 = vpop.f32.mrf.mxu2 }
 0x201   : > { %v1754_v54 = vadd.f32 %v624_v48, %v578_v52  ;;  %v1229_v52 = vld [vmem:[%s1892_s3 + $0x40] sm:$0xff] }
 0x203   : > { %v640_v57 = vand.u32 2147483647, %v1754_v54 }
 0x205   : > { %v644_v62 = vsub.f32 0.0, %v640_v57  ;;  %v724_v57 = vpop.permute.xlu0 %723 }
 0x207   : > { %v648_v2 = vmul.f32 1.442695, %v644_v62 }
 0x208   : > { %v627_v50 = vpop.f32.mrf.mxu2 }
 0x209   : > { %v1752_v53 = vadd.f32 %v627_v50, %v583_v51 }
 0x20b   : > { %v641_v55 = vand.u32 2147483647, %v1752_v53  ;;  %v637_v43 = vmax.f32 %v1752_v53, 0.0  ;;  %v1230_v53 = vld [vmem:[%s1892_s3 + $0x48] sm:$0xff] }
 0x20d   : > { %v645_v60 = vsub.f32 0.0, %v641_v55  ;;  %v1232_v55 = vld [vmem:[%s1892_s3 + $0x58] sm:$0xff] }
 0x20f   : > { %v650_v0 = vmul.f32 1.442695, %v645_v60  ;;  %v709_v60 = vpop.permute.xlu0 %708 }
 0x210   : > { %v630_v58 = vpop.f32.mrf.mxu2 }
 0x211   : > { %v1758_v59 = vadd.f32 %v630_v58, %v588_v56 }
 0x213   : > { %v642_v61 = vand.u32 2147483647, %v1758_v59  ;;  %v638_v42 = vmax.f32 %v1758_v59, 0.0  ;;  %v714_v59 = vpop.permute.xlu2 %713 }
 0x215   : > { %v646_v63 = vsub.f32 0.0, %v642_v61 }
 0x217   : > { %v652_v1 = vmul.f32 1.442695, %v646_v63 }
 0x218   : > { %v633_v3 = vpop.f32.mrf.mxu2 }
 0x219   : > { %1364 = vpow2.f32 %v652_v1  ;;  %v634_v4 = vadd.f32 %v633_v3, %v593_v49  ;;  %v636_v49 = vmax.f32 %v1754_v54, 0.0  ;;  %v1231_v54 = vld [vmem:[%s1892_s3 + $0x50] sm:$0xff] }
 0x21a   : > { %1366 = vpow2.f32 %v650_v0  ;;  %v719_v0 = vpop.permute.xlu1 %718 }
 0x21b   : > { %v643_v5 = vand.u32 2147483647, %v634_v4  ;;  %1368 = vpow2.f32 %v648_v2  ;;  %v639_v37 = vmax.f32 %v634_v4, 0.0 }
 0x21d   : > { %v647_v6 = vsub.f32 0.0, %v643_v5 }
 0x21f   : > { %v1365_v7 = vpop.eup %1364  ;;  %v654_v8 = vmul.f32 1.442695, %v647_v6 }
 0x220   : > { %v1367_v9 = vpop.eup %1366  ;;  %v674_v11 = vadd.f32 1.0, %v1365_v7  ;;  %v677_v17 = vmul.f32 -0.5, %v1365_v7  ;;  %v680_v25 = vand.u32 2147483647, %v1365_v7 }
 0x221   : > { %1370 = vpow2.f32 %v654_v8  ;;  %v1369_v10 = vpop.eup %1368  ;;  %v665_v12 = vadd.f32 1.0, %v1367_v9  ;;  %v668_v18 = vmul.f32 -0.5, %v1367_v9  ;;  %v671_v31 = vand.u32 2147483647, %v1367_v9 }
 0x222   : > { %v656_v13 = vadd.f32 1.0, %v1369_v10  ;;  %1372 = vlog2.f32 %v674_v11  ;;  %v659_v20 = vmul.f32 -0.5, %v1369_v10  ;;  %v678_v22 = vadd.f32 1.0, %v677_v17 }
 0x223   : > { %1374 = vlog2.f32 %v665_v12  ;;  %v669_v29 = vadd.f32 1.0, %v668_v18  ;;  %v662_v33 = vand.u32 2147483647, %v1369_v10  ;;  %vm681_vm12 = vcmp.lt.f32.partialorder %v680_v25, 0.0004427343 }
 0x224   : > { %1376 = vlog2.f32 %v656_v13  ;;  %v660_v32 = vadd.f32 1.0, %v659_v20  ;;  %v679_v35 = vmul.f32 %v1365_v7, %v678_v22  ;;  %vm672_vm13 = vcmp.lt.f32.partialorder %v671_v31, 0.0004427343 }
 0x225   : > { %v670_v40 = vmul.f32 %v1367_v9, %v669_v29  ;;  %vm663_vm14 = vcmp.lt.f32.partialorder %v662_v33, 0.0004427343 }
 0x226   : > { %v661_v46 = vmul.f32 %v1369_v10, %v660_v32 }
 0x227   : > { %v1371_v14 = vpop.eup %1370 }
 0x228   : > { %v683_v15 = vadd.f32 1.0, %v1371_v14  ;;  %v686_v16 = vmul.f32 -0.5, %v1371_v14  ;;  %v1373_v19 = vpop.eup %1372  ;;  %v689_v24 = vand.u32 2147483647, %v1371_v14 }
 0x229   : > { %v1375_v23 = vpop.eup %1374  ;;  %v676_v28 = vmul.f32 0.6931472, %v1373_v19 }
 0x22a   : > { %1378 = vlog2.f32 %v683_v15  ;;  %v687_v21 = vadd.f32 1.0, %v686_v16  ;;  %v1377_v26 = vpop.eup %1376  ;;  %v667_v27 = vmul.f32 0.6931472, %v1375_v23  ;;  %vm690_vm11 = vcmp.lt.f32.partialorder %v689_v24, 0.0004427343 }
 0x22b   : > { %v682_v39 = vsel %vm681_vm12, %v679_v35, %v676_v28  ;;  %v658_v41 = vmul.f32 0.6931472, %v1377_v26 }
 0x22c   : > { %v688_v36 = vmul.f32 %v1371_v14, %v687_v21  ;;  %v673_v45 = vsel %vm672_vm13, %v670_v40, %v667_v27  ;;  %v694_v47 = vadd.f32 %v682_v39, %v638_v42 }
 0x22d   : > { %v664_v48 = vsel %vm663_vm14, %v661_v46, %v658_v41  ;;  %v693_v50 = vadd.f32 %v673_v45, %v637_v43 }
 0x22e   : > { %v692_v51 = vadd.f32 %v664_v48, %v636_v49 }
 0x230   : > { %v1379_v30 = vpop.eup %1378 }
 0x231   : > { %v685_v34 = vmul.f32 0.6931472, %v1379_v30 }
 0x233   : > { %v691_v38 = vsel %vm690_vm11, %v688_v36, %v685_v34 }
 0x234   : > { %v695_v44 = vadd.f32 %v691_v38, %v639_v37 }
 0x236   : > { %750 = vmatpush.msrb.mxu3 %v695_v44 }
 0x238   : > { %751 = vmatpush.msrb.mxu3 %v694_v47 }
 0x23a   : > { %752 = vmatpush.msrb.mxu3 %v693_v50 }
 0x23c   : > { %753 = vmatpush.msrb.mxu3 %v692_v51 }
 0x23d   : > { %1237 = vmatmul.msk.f32.vlgmr.msrb.gmra.mxu3 %vm463_vm6, %v1229_v52 }
 0x245   : > { %1238 = vmatmul.msk.f32.gmra.mxu3 %vm463_vm6, %v1230_v53 }
 0x24d   : > { %1239 = vmatmul.msk.f32.gmra.mxu3 %vm463_vm6, %v1231_v54 }
 0x255   : > { %1240 = vmatmul.msk.f32.gmra.mxu3 %vm463_vm6, %v1232_v55 }
 0x2c0   : > { %v755_v56 = vpop.f32.mrf.mxu3 }
 0x2c1   : > { %v1782_v62 = vadd.f32 %v755_v56, %v709_v60  ;;  %v1241_v60 = vld [vmem:[%s1892_s3 + $0x60] sm:$0xff] }
 0x2c3   : > { %v771_v1 = vand.u32 2147483647, %v1782_v62 }
 0x2c5   : > { %v775_v6 = vsub.f32 0.0, %v771_v1  ;;  %v855_v1 = vpop.permute.xlu1 %854 }
 0x2c7   : > { %v779_v10 = vmul.f32 1.442695, %v775_v6 }
 0x2c8   : > { %v758_v58 = vpop.f32.mrf.mxu3 }
 0x2c9   : > { %v1780_v61 = vadd.f32 %v758_v58, %v714_v59 }
 0x2cb   : > { %v772_v63 = vand.u32 2147483647, %v1780_v61  ;;  %v768_v54 = vmax.f32 %v1780_v61, 0.0  ;;  %v1242_v61 = vld [vmem:[%s1892_s3 + $0x68] sm:$0xff] }
 0x2cd   : > { %v776_v4 = vsub.f32 0.0, %v772_v63  ;;  %v1244_v63 = vld [vmem:[%s1892_s3 + $0x78] sm:$0xff] }
 0x2cf   : > { %v781_v8 = vmul.f32 1.442695, %v776_v4  ;;  %v840_v4 = vpop.permute.xlu1 %839 }
 0x2d0   : > { %v761_v2 = vpop.f32.mrf.mxu3 }
 0x2d1   : > { %v1786_v3 = vadd.f32 %v761_v2, %v719_v0 }
 0x2d3   : > { %v773_v5 = vand.u32 2147483647, %v1786_v3  ;;  %v769_v50 = vmax.f32 %v1786_v3, 0.0  ;;  %v845_v3 = vpop.permute.xlu0 %844 }
 0x2d5   : > { %v777_v7 = vsub.f32 0.0, %v773_v5 }
 0x2d7   : > { %v783_v9 = vmul.f32 1.442695, %v777_v7 }
 0x2d8   : > { %v764_v11 = vpop.f32.mrf.mxu3 }
 0x2d9   : > { %1380 = vpow2.f32 %v783_v9  ;;  %v765_v12 = vadd.f32 %v764_v11, %v724_v57  ;;  %v767_v57 = vmax.f32 %v1782_v62, 0.0  ;;  %v1243_v62 = vld [vmem:[%s1892_s3 + $0x70] sm:$0xff] }
 0x2da   : > { %1382 = vpow2.f32 %v781_v8  ;;  %v850_v8 = vpop.permute.xlu2 %849 }
 0x2db   : > { %v774_v13 = vand.u32 2147483647, %v765_v12  ;;  %1384 = vpow2.f32 %v779_v10  ;;  %v770_v46 = vmax.f32 %v765_v12, 0.0 }
 0x2dd   : > { %v778_v14 = vsub.f32 0.0, %v774_v13 }
 0x2df   : > { %v1381_v15 = vpop.eup %1380  ;;  %v785_v16 = vmul.f32 1.442695, %v778_v14 }
 0x2e0   : > { %v1383_v17 = vpop.eup %1382  ;;  %v805_v19 = vadd.f32 1.0, %v1381_v15  ;;  %v808_v25 = vmul.f32 -0.5, %v1381_v15  ;;  %v811_v34 = vand.u32 2147483647, %v1381_v15 }
 0x2e1   : > { %1386 = vpow2.f32 %v785_v16  ;;  %v1385_v18 = vpop.eup %1384  ;;  %v796_v20 = vadd.f32 1.0, %v1383_v17  ;;  %v799_v26 = vmul.f32 -0.5, %v1383_v17  ;;  %v802_v38 = vand.u32 2147483647, %v1383_v17 }
 0x2e2   : > { %v787_v21 = vadd.f32 1.0, %v1385_v18  ;;  %1388 = vlog2.f32 %v805_v19  ;;  %v790_v29 = vmul.f32 -0.5, %v1385_v18  ;;  %v809_v31 = vadd.f32 1.0, %v808_v25 }
 0x2e3   : > { %1390 = vlog2.f32 %v796_v20  ;;  %v800_v27 = vadd.f32 1.0, %v799_v26  ;;  %v793_v40 = vand.u32 2147483647, %v1385_v18  ;;  %vm812_vm0 = vcmp.lt.f32.partialorder %v811_v34, 0.0004427343 }
 0x2e4   : > { %1392 = vlog2.f32 %v787_v21  ;;  %v791_v39 = vadd.f32 1.0, %v790_v29  ;;  %v810_v44 = vmul.f32 %v1381_v15, %v809_v31  ;;  %vm803_vm1 = vcmp.lt.f32.partialorder %v802_v38, 0.0004427343 }
 0x2e5   : > { %v801_v48 = vmul.f32 %v1383_v17, %v800_v27  ;;  %vm794_vm2 = vcmp.lt.f32.partialorder %v793_v40, 0.0004427343 }
 0x2e6   : > { %v792_v53 = vmul.f32 %v1385_v18, %v791_v39 }
 0x2e7   : > { %v1387_v22 = vpop.eup %1386 }
 0x2e8   : > { %v814_v23 = vadd.f32 1.0, %v1387_v22  ;;  %v817_v24 = vmul.f32 -0.5, %v1387_v22  ;;  %v1389_v28 = vpop.eup %1388  ;;  %v820_v33 = vand.u32 2147483647, %v1387_v22 }
 0x2e9   : > { %v1391_v32 = vpop.eup %1390  ;;  %v807_v35 = vmul.f32 0.6931472, %v1389_v28 }
 0x2ea   : > { %1394 = vlog2.f32 %v814_v23  ;;  %v818_v30 = vadd.f32 1.0, %v817_v24  ;;  %v1393_v36 = vpop.eup %1392  ;;  %v798_v45 = vmul.f32 0.6931472, %v1391_v32  ;;  %vm821_vm15 = vcmp.lt.f32.partialorder %v820_v33, 0.0004427343 }
 0x2eb   : > { %v813_v47 = vsel %vm812_vm0, %v810_v44, %v807_v35  ;;  %v789_v49 = vmul.f32 0.6931472, %v1393_v36 }
 0x2ec   : > { %v819_v42 = vmul.f32 %v1387_v22, %v818_v30  ;;  %v804_v52 = vsel %vm803_vm1, %v801_v48, %v798_v45  ;;  %v825_v55 = vadd.f32 %v813_v47, %v769_v50 }
 0x2ed   : > { %v795_v56 = vsel %vm794_vm2, %v792_v53, %v789_v49  ;;  %v824_v58 = vadd.f32 %v804_v52, %v768_v54 }
 0x2ee   : > { %v823_v59 = vadd.f32 %v795_v56, %v767_v57 }
 0x2f0   : > { %v1395_v37 = vpop.eup %1394 }
 0x2f1   : > { %v816_v41 = vmul.f32 0.6931472, %v1395_v37 }
 0x2f3   : > { %v822_v43 = vsel %vm821_vm15, %v819_v42, %v816_v41 }
 0x2f4   : > { %v826_v51 = vadd.f32 %v822_v43, %v770_v46 }
 0x2f6   : > { %881 = vmatpush.msrb.mxu0 %v826_v51 }
 0x2f8   : > { %882 = vmatpush.msrb.mxu0 %v825_v55 }
 0x2fa   : > { %883 = vmatpush.msrb.mxu0 %v824_v58 }
 0x2fc   : > { %884 = vmatpush.msrb.mxu0 %v823_v59 }
 0x2fd   : > { %1249 = vmatmul.msk.f32.vlgmr.msrb.gmra.mxu0 %vm463_vm6, %v1241_v60 }
 0x305   : > { %1250 = vmatmul.msk.f32.gmra.mxu0 %vm463_vm6, %v1242_v61 }
 0x30d   : > { %1251 = vmatmul.msk.f32.gmra.mxu0 %vm463_vm6, %v1243_v62 }
 0x315   : > { %1252 = vmatmul.msk.f32.gmra.mxu0 %vm463_vm6, %v1244_v63 }
 0x37a   : > { %v886_v0 = vpop.f32.mrf.mxu0 }
 0x37b   : > { %v1810_v6 = vadd.f32 %v886_v0, %v840_v4  ;;  %v1253_v4 = vld [vmem:[%s1892_s3 + $0x80] sm:$0xff] }
 0x37d   : > { %v902_v9 = vand.u32 2147483647, %v1810_v6 }
 0x37f   : > { %v906_v14 = vsub.f32 0.0, %v902_v9  ;;  %v986_v9 = vpop.permute.xlu2 %985 }
 0x381   : > { %v910_v18 = vmul.f32 1.442695, %v906_v14 }
 0x382   : > { %v889_v2 = vpop.f32.mrf.mxu0 }
 0x383   : > { %v1808_v5 = vadd.f32 %v889_v2, %v845_v3 }
 0x385   : > { %v903_v7 = vand.u32 2147483647, %v1808_v5  ;;  %v899_v62 = vmax.f32 %v1808_v5, 0.0  ;;  %v1254_v5 = vld [vmem:[%s1892_s3 + $0x88] sm:$0xff] }
 0x387   : > { %v907_v12 = vsub.f32 0.0, %v903_v7  ;;  %v1256_v7 = vld [vmem:[%s1892_s3 + $0x98] sm:$0xff] }
 0x389   : > { %v912_v16 = vmul.f32 1.442695, %v907_v12  ;;  %v971_v12 = vpop.permute.xlu2 %970 }
 0x38a   : > { %v892_v10 = vpop.f32.mrf.mxu0 }
 0x38b   : > { %v1814_v11 = vadd.f32 %v892_v10, %v850_v8 }
 0x38d   : > { %v904_v13 = vand.u32 2147483647, %v1814_v11  ;;  %v900_v58 = vmax.f32 %v1814_v11, 0.0  ;;  %v976_v11 = vpop.permute.xlu1 %975 }
 0x38f   : > { %v908_v15 = vsub.f32 0.0, %v904_v13 }
 0x391   : > { %v914_v17 = vmul.f32 1.442695, %v908_v15 }
 0x392   : > { %v895_v19 = vpop.f32.mrf.mxu0 }
 0x393   : > { %1396 = vpow2.f32 %v914_v17  ;;  %v896_v20 = vadd.f32 %v895_v19, %v855_v1  ;;  %v898_v1 = vmax.f32 %v1810_v6, 0.0  ;;  %v1255_v6 = vld [vmem:[%s1892_s3 + $0x90] sm:$0xff] }
 0x394   : > { %1398 = vpow2.f32 %v912_v16  ;;  %v981_v16 = vpop.permute.xlu0 %980 }
 0x395   : > { %v905_v21 = vand.u32 2147483647, %v896_v20  ;;  %1400 = vpow2.f32 %v910_v18  ;;  %v901_v53 = vmax.f32 %v896_v20, 0.0 }
 0x397   : > { %v909_v22 = vsub.f32 0.0, %v905_v21 }
 0x399   : > { %v1397_v23 = vpop.eup %1396  ;;  %v916_v24 = vmul.f32 1.442695, %v909_v22 }
 0x39a   : > { %v1399_v25 = vpop.eup %1398  ;;  %v936_v28 = vadd.f32 1.0, %v1397_v23  ;;  %v939_v34 = vmul.f32 -0.5, %v1397_v23  ;;  %v942_v41 = vand.u32 2147483647, %v1397_v23 }
 0x39b   : > { %1402 = vpow2.f32 %v916_v24  ;;  %v1401_v26 = vpop.eup %1400  ;;  %v927_v29 = vadd.f32 1.0, %v1399_v25  ;;  %v930_v36 = vmul.f32 -0.5, %v1399_v25  ;;  %v933_v43 = vand.u32 2147483647, %v1399_v25 }
 0x39c   : > { %v918_v30 = vadd.f32 1.0, %v1401_v26  ;;  %1404 = vlog2.f32 %v936_v28  ;;  %v921_v27 = vmul.f32 -0.5, %v1401_v26  ;;  %v940_v38 = vadd.f32 1.0, %v939_v34 }
 0x39d   : > { %1406 = vlog2.f32 %v927_v29  ;;  %v931_v45 = vadd.f32 1.0, %v930_v36  ;;  %v924_v48 = vand.u32 2147483647, %v1401_v26  ;;  %vm943_vm4 = vcmp.lt.f32.partialorder %v942_v41, 0.0004427343 }
 0x39e   : > { %1408 = vlog2.f32 %v918_v30  ;;  %v922_v47 = vadd.f32 1.0, %v921_v27  ;;  %v941_v51 = vmul.f32 %v1397_v23, %v940_v38  ;;  %vm934_vm5 = vcmp.lt.f32.partialorder %v933_v43, 0.0004427343 }
 0x39f   : > { %v932_v56 = vmul.f32 %v1399_v25, %v931_v45  ;;  %vm925_vm7 = vcmp.lt.f32.partialorder %v924_v48, 0.0004427343 }
 0x3a0   : > { %v923_v61 = vmul.f32 %v1401_v26, %v922_v47 }
 0x3a1   : > { %v1403_v31 = vpop.eup %1402 }
 0x3a2   : > { %v945_v32 = vadd.f32 1.0, %v1403_v31  ;;  %v948_v33 = vmul.f32 -0.5, %v1403_v31  ;;  %v1405_v35 = vpop.eup %1404  ;;  %v951_v40 = vand.u32 2147483647, %v1403_v31 }
 0x3a3   : > { %v1407_v39 = vpop.eup %1406  ;;  %v938_v44 = vmul.f32 0.6931472, %v1405_v35 }
 0x3a4   : > { %1410 = vlog2.f32 %v945_v32  ;;  %v949_v37 = vadd.f32 1.0, %v948_v33  ;;  %v1409_v42 = vpop.eup %1408  ;;  %v929_v52 = vmul.f32 0.6931472, %v1407_v39  ;;  %vm952_vm3 = vcmp.lt.f32.partialorder %v951_v40, 0.0004427343 }
 0x3a5   : > { %v944_v55 = vsel %vm943_vm4, %v941_v51, %v938_v44  ;;  %v920_v57 = vmul.f32 0.6931472, %v1409_v42 }
 0x3a6   : > { %v950_v50 = vmul.f32 %v1403_v31, %v949_v37  ;;  %v935_v60 = vsel %vm934_vm5, %v932_v56, %v929_v52  ;;  %v956_v63 = vadd.f32 %v944_v55, %v900_v58 }
 0x3a7   : > { %v926_v0 = vsel %vm925_vm7, %v923_v61, %v920_v57  ;;  %v955_v2 = vadd.f32 %v935_v60, %v899_v62 }
 0x3a8   : > { %v954_v3 = vadd.f32 %v926_v0, %v898_v1 }
 0x3aa   : > { %v1411_v46 = vpop.eup %1410 }
 0x3ab   : > { %v947_v49 = vmul.f32 0.6931472, %v1411_v46 }
 0x3ad   : > { %v953_v54 = vsel %vm952_vm3, %v950_v50, %v947_v49 }
 0x3ae   : > { %v957_v59 = vadd.f32 %v953_v54, %v901_v53 }
 0x3b0   : > { %1012 = vmatpush.msrb.mxu1 %v957_v59 }
 0x3b2   : > { %1013 = vmatpush.msrb.mxu1 %v956_v63 }
 0x3b4   : > { %1014 = vmatpush.msrb.mxu1 %v955_v2 }
 0x3b6   : > { %1015 = vmatpush.msrb.mxu1 %v954_v3 }
 0x3b7   : > { %1261 = vmatmul.msk.f32.vlgmr.msrb.gmra.mxu1 %vm463_vm6, %v1253_v4 }
 0x3bf   : > { %1262 = vmatmul.msk.f32.gmra.mxu1 %vm463_vm6, %v1254_v5 }
 0x3c7   : > { %1263 = vmatmul.msk.f32.gmra.mxu1 %vm463_vm6, %v1255_v6 }
 0x3cf   : > { %1264 = vmatmul.msk.f32.gmra.mxu1 %vm463_vm6, %v1256_v7 }
 0x434   : > { %v1017_v8 = vpop.f32.mrf.mxu1 }
 0x435   : > { %v1838_v14 = vadd.f32 %v1017_v8, %v971_v12  ;;  %v1089_v12 = vld [vmem:[%s1894_s5] sm:$0x1] }
 0x437   : > { %v1033_v17 = vand.u32 2147483647, %v1838_v14 }
 0x439   : > { %v1037_v22 = vsub.f32 0.0, %v1033_v17 }
 0x43b   : > { %v1041_v26 = vmul.f32 1.442695, %v1037_v22 }
 0x43c   : > { %v1020_v10 = vpop.f32.mrf.mxu1 }
 0x43d   : > { %v1836_v13 = vadd.f32 %v1020_v10, %v976_v11 }
 0x43f   : > { %v1034_v15 = vand.u32 2147483647, %v1836_v13  ;;  %v1030_v6 = vmax.f32 %v1836_v13, 0.0  ;;  %v1094_v13 = vpop.permute.xlu0 %1093 }
 0x441   : > { %v1038_v20 = vsub.f32 0.0, %v1034_v15 }
 0x443   : > { %v1043_v24 = vmul.f32 1.442695, %v1038_v20 }
 0x444   : > { %v1023_v18 = vpop.f32.mrf.mxu1 }
 0x445   : > { %v1842_v19 = vadd.f32 %v1023_v18, %v981_v16 }
 0x447   : > { %v1035_v21 = vand.u32 2147483647, %v1842_v19  ;;  %v1031_v2 = vmax.f32 %v1842_v19, 0.0 }
 0x449   : > { %v1039_v23 = vsub.f32 0.0, %v1035_v21 }
 0x44b   : > { %v1045_v25 = vmul.f32 1.442695, %v1039_v23 }
 0x44c   : > { %v1026_v28 = vpop.f32.mrf.mxu1 }
 0x44d   : > { %1412 = vpow2.f32 %v1045_v25  ;;  %v1027_v29 = vadd.f32 %v1026_v28, %v986_v9  ;;  %v1029_v9 = vmax.f32 %v1838_v14, 0.0  ;;  %v1096_v14 = vperm.slane %v1094_v13, 0 }
 0x44e   : > { %1414 = vpow2.f32 %v1043_v24 }
 0x44f   : > { %v1036_v30 = vand.u32 2147483647, %v1027_v29  ;;  %1416 = vpow2.f32 %v1041_v26  ;;  %v1032_v61 = vmax.f32 %v1027_v29, 0.0 }
 0x451   : > { %v1040_v31 = vsub.f32 0.0, %v1036_v30 }
 0x453   : > { %v1413_v32 = vpop.eup %1412  ;;  %v1047_v33 = vmul.f32 1.442695, %v1040_v31 }
 0x454   : > { %v1415_v34 = vpop.eup %1414  ;;  %v1067_v35 = vadd.f32 1.0, %v1413_v32  ;;  %v1070_v41 = vmul.f32 -0.5, %v1413_v32  ;;  %v1073_v49 = vand.u32 2147483647, %v1413_v32 }
 0x455   : > { %1418 = vpow2.f32 %v1047_v33  ;;  %v1417_v36 = vpop.eup %1416  ;;  %v1058_v27 = vadd.f32 1.0, %v1415_v34  ;;  %v1061_v42 = vmul.f32 -0.5, %v1415_v34  ;;  %v1064_v54 = vand.u32 2147483647, %v1415_v34 }
 0x456   : > { %v1049_v37 = vadd.f32 1.0, %v1417_v36  ;;  %1420 = vlog2.f32 %v1067_v35  ;;  %v1052_v45 = vmul.f32 -0.5, %v1417_v36  ;;  %v1071_v43 = vadd.f32 1.0, %v1070_v41 }
 0x457   : > { %1422 = vlog2.f32 %v1058_v27  ;;  %v1062_v52 = vadd.f32 1.0, %v1061_v42  ;;  %v1055_v56 = vand.u32 2147483647, %v1417_v36  ;;  %vm1074_vm9 = vcmp.lt.f32.partialorder %v1073_v49, 0.0004427343 }
 0x458   : > { %1424 = vlog2.f32 %v1049_v37  ;;  %v1053_v55 = vadd.f32 1.0, %v1052_v45  ;;  %v1072_v59 = vmul.f32 %v1413_v32, %v1071_v43  ;;  %vm1065_vm10 = vcmp.lt.f32.partialorder %v1064_v54, 0.0004427343 }
 0x459   : > { %v1063_v0 = vmul.f32 %v1415_v34, %v1062_v52  ;;  %vm1056_vm11 = vcmp.lt.f32.partialorder %v1055_v56, 0.0004427343 }
 0x45a   : > { %v1054_v5 = vmul.f32 %v1417_v36, %v1053_v55 }
 0x45b   : > { %v1419_v38 = vpop.eup %1418 }
 0x45c   : > { %v1076_v39 = vadd.f32 1.0, %v1419_v38  ;;  %v1079_v40 = vmul.f32 -0.5, %v1419_v38  ;;  %v1421_v44 = vpop.eup %1420  ;;  %v1082_v48 = vand.u32 2147483647, %v1419_v38 }
 0x45d   : > { %v1423_v47 = vpop.eup %1422  ;;  %v1069_v51 = vmul.f32 0.6931472, %v1421_v44 }
 0x45e   : > { %1426 = vlog2.f32 %v1076_v39  ;;  %v1080_v46 = vadd.f32 1.0, %v1079_v40  ;;  %v1425_v50 = vpop.eup %1424  ;;  %v1060_v60 = vmul.f32 0.6931472, %v1423_v47  ;;  %vm1083_vm8 = vcmp.lt.f32.partialorder %v1082_v48, 0.0004427343 }
 0x45f   : > { %v1075_v63 = vsel %vm1074_vm9, %v1072_v59, %v1069_v51  ;;  %v1051_v1 = vmul.f32 0.6931472, %v1425_v50 }
 0x460   : > { %v1081_v58 = vmul.f32 %v1419_v38, %v1080_v46  ;;  %v1066_v4 = vsel %vm1065_vm10, %v1063_v0, %v1060_v60  ;;  %v1087_v7 = vadd.f32 %v1075_v63, %v1031_v2 }
 0x461   : > { %v1057_v8 = vsel %vm1056_vm11, %v1054_v5, %v1051_v1  ;;  %v1086_v10 = vadd.f32 %v1066_v4, %v1030_v6 }
 0x462   : > { %v1085_v11 = vadd.f32 %v1057_v8, %v1029_v9 }
 0x464   : > { %v1427_v53 = vpop.eup %1426 }
 0x465   : > { %v1078_v57 = vmul.f32 0.6931472, %v1427_v53 }
 0x467   : > { %v1084_v62 = vsel %vm1083_vm8, %v1081_v58, %v1078_v57 }
 0x468   : > { %v1088_v3 = vadd.f32 %v1084_v62, %v1032_v61 }
 0x46a   : > { %1112 = vmatpush.msra.mxu2 %v1088_v3 }
 0x46c   : > { %1113 = vmatpush.msra.mxu2 %v1087_v7 }
 0x46e   : > { %1114 = vmatpush.msra.mxu2 %v1086_v10 }
 0x470   : > { %1115 = vmatpush.msra.mxu2 %v1085_v11 }
 0x471   : > { %1265 = vmatmul.msk.f32.vlgmr.msra.gmra.mxu2 %vm463_vm6, %v1089_v12 }
 0x4f4   : > { %v1117_v15 = vpop.f32.mrf.mxu2 }
 0x4f5   : > { %v1118_v16 = vadd.f32 %v1117_v15, %v1096_v14 }
 0x4f7   : > { %1120 = vst [vmem:[%s292_s25] sm:$0x1] %v1118_v16 }
 0x4f8   : > { %1455 = shalt.err (!%p1452_p5)
}
 0x4f9   : > { %1273 = dma.vmem_to_hbm [thread:$0]  (%p1592_p4), %s1134_s6, 16, %s1136_s9, %s1122_s11  }
 0x4fa PF: > { %p1279_p6 = scmp.ge.s32.totalorder %s1506_s8, 2  ;;  %s1147_s21 = sand.u32 1, %s1486_s26  }
 0x4fb   : > { %s1148_s22 = scalar_lea.sflag [#allocation4], %s1147_s21 }
 0x4fc   : > { %p1276_p7 = pnand %p1279_p6, %p1599_p8 }
 0x4fe   : > { %p1277_p9 = pneg %p1276_p7 }
 0x500   : > { %1481 = dma.done.wait (%p1277_p9), %s1148_s22, 16  }
 0x501   : > { %1483 = vsyncadd (%p1277_p9), %s1148_s22, 4294967280  ;;  %s22_s8 = sadd.s32 1, %s1506_s8   ;;  %s1899_s26 = smov %s1490_s27 }
 0x502   : > { %p19_p10 = scmp.ge.s32.totalorder %s22_s8, 4   ;;  %s1900_s27 = smov %s1494_s28 }
 0x503   : > { %s1901_s28 = smov %s1605_s15  ;;  %s1902_s29 = smov %s1502_s30 }
 0x504   : > { %s1903_s30 = smov %s1905_s10  ;;  %21 = sbr.rel (!%p19_p10) target bundleno = 7 (0x7), region = 91 }
 0x509   :  { %1153 = vsyncpa [#allocation4], 1 }
 0x50a   :  { %1155 = vsyncpa [#allocation4 + $0x1], 1 }

</bundles_post_ra>
